<compile_context>
chip_gen: v7x
topology: tpu7x:2x2x1
jax: 0.10.0
libtpu: 0.0.40
codegen_flags: <defaults>
</compile_context>

<pallas_src>
import jax
import jax.numpy as jnp
from jax import lax
from jax.experimental import pallas as pl
from jax.experimental.pallas import tpu as pltpu


# ----------------------------------------------------------------------------
# Kernel: one grid step per batch tile; whole sequence for that tile resident.
# ----------------------------------------------------------------------------
def _lstm_policy_kernel(
    x_ref,        # (1, T*bt, S)  time-major-within-tile input slab
    h0_ref,       # (1, bt, H)
    c0_ref,       # (1, bt, H)
    w_ih_ref,     # (S, 4H)       transposed weight_ih
    w_hh_ref,     # (H, 4H)       transposed weight_hh
    b_ref,        # (1, 4H)       b_ih + b_hh
    w_head_ref,   # (H, 2A)       [W_mean^T | W_logstd^T]
    b_head_ref,   # (1, 2A)       [b_mean | b_logstd]
    mean_ref,     # (bt, A)   out
    std_ref,      # (bt, A)   out (exp applied in-kernel)
    hn_ref,       # (1, bt, H) out
    cn_ref,       # (1, bt, H) out
    xg_ref,       # VMEM (T*bt, 4H) scratch: precomputed input projections
):
    H = w_hh_ref.shape[0]
    A = mean_ref.shape[-1]
    bt = h0_ref.shape[1]
    T = x_ref.shape[1] // bt

    # ---- Hoisted input projection: one (T*bt, S) @ (S, 4H) matmul ----
    xg_ref[...] = (
        jnp.dot(x_ref[0], w_ih_ref[...], preferred_element_type=jnp.float32)
        + b_ref[...]
    )

    w_hh = w_hh_ref[...]

    # Hoisted static lane mask: lanes [2H, 3H) are the tanh ('g') gate.
    lane = lax.broadcasted_iota(jnp.int32, (bt, 4 * H), 1)
    g_mask = (lane >= 2 * H) & (lane < 3 * H)

    h = h0_ref[0]
    c = c0_ref[0]
    # ---- Serial recurrence, statically unrolled (T is small) ----
    for t in range(T):
        gates = xg_ref[pl.ds(t * bt, bt)] + jnp.dot(
            h, w_hh, preferred_element_type=jnp.float32
        )                                                   # (bt, 4H)
        # Two full-width EUP ops + one select instead of 4 quarter-width ones.
        act = jnp.where(g_mask, jnp.tanh(gates), jax.nn.sigmoid(gates))
        i_g = act[:, 0 * H:1 * H]
        f_g = act[:, 1 * H:2 * H]
        g_g = act[:, 2 * H:3 * H]
        o_g = act[:, 3 * H:4 * H]
        c = f_g * c + i_g * g_g
        h = o_g * jnp.tanh(c)

    # ---- Fused heads: one (bt, H) @ (H, 2A) matmul; exp on the idle EUP ----
    head = (
        jnp.dot(h, w_head_ref[...], preferred_element_type=jnp.float32)
        + b_head_ref[...]
    )
    mean_ref[...] = head[:, :A].astype(mean_ref.dtype)
    std_ref[...] = jnp.exp(head[:, A:]).astype(std_ref.dtype)
    hn_ref[0] = h.astype(hn_ref.dtype)
    cn_ref[0] = c.astype(cn_ref.dtype)


# ----------------------------------------------------------------------------
# Wrapper: batch-first input like the PyTorch module; parameters are plain JAX.
# ----------------------------------------------------------------------------
@jax.jit
def lstm_policy_forward(state, params, h0, c0):
    """state: (B, T, S) f32.  h0, c0: (1, B, H).  Returns (mean, std, (h_n, c_n))."""
    B, T, S = state.shape
    H = params["w_hh_t"].shape[0]
    A = params["w_head_t"].shape[1] // 2

    # Batch tile: one tile per TensorCore-friendly chunk of sequences.
    bt = B if B <= 128 else 128
    assert B % bt == 0, "batch must be divisible by the batch tile"
    nb = B // bt

    # One fused XLA copy: batch-tiled, time-major within each tile, 2D-matmul
    # ready (no in-kernel relayout). Row index within a tile = t*bt + b_local.
    x_blk = jnp.transpose(
        state.reshape(nb, bt, T, S), (0, 2, 1, 3)
    ).reshape(nb, T * bt, S)

    out_shapes = (
        jax.ShapeDtypeStruct((B, A), jnp.float32),     # action_mean
        jax.ShapeDtypeStruct((B, A), jnp.float32),     # action_std
        jax.ShapeDtypeStruct((1, B, H), jnp.float32),  # h_n
        jax.ShapeDtypeStruct((1, B, H), jnp.float32),  # c_n
    )

    grid_spec = pltpu.PrefetchScalarGridSpec(
        num_scalar_prefetch=0,
        grid=(nb,),
        in_specs=[
            pl.BlockSpec((1, T * bt, S), lambda i: (i, 0, 0)),   # x slab per tile
            pl.BlockSpec((1, bt, H), lambda i: (0, i, 0)),       # h0 tile
            pl.BlockSpec((1, bt, H), lambda i: (0, i, 0)),       # c0 tile
            pl.BlockSpec((S, 4 * H), lambda i: (0, 0)),          # W_ih^T
            pl.BlockSpec((H, 4 * H), lambda i: (0, 0)),          # W_hh^T
            pl.BlockSpec((1, 4 * H), lambda i: (0, 0)),          # bias
            pl.BlockSpec((H, 2 * A), lambda i: (0, 0)),          # fused head weight
            pl.BlockSpec((1, 2 * A), lambda i: (0, 0)),          # fused head bias
        ],
        out_specs=[
            pl.BlockSpec((bt, A), lambda i: (i, 0)),
            pl.BlockSpec((bt, A), lambda i: (i, 0)),
            pl.BlockSpec((1, bt, H), lambda i: (0, i, 0)),
            pl.BlockSpec((1, bt, H), lambda i: (0, i, 0)),
        ],
        scratch_shapes=[
            pltpu.VMEM((T * bt, 4 * H), jnp.float32),  # 2D, lane-dense xg scratch
        ],
    )

    mean, std, h_n, c_n = pl.pallas_call(
        _lstm_policy_kernel,
        out_shape=out_shapes,
        grid_spec=grid_spec,
        compiler_params=pltpu.CompilerParams(
            dimension_semantics=("parallel",),   # batch tiles -> both TCs on v7x
        ),
    )(
        x_blk, h0, c0,
        params["w_ih_t"], params["w_hh_t"], params["bias"],
        params["w_head_t"], params["b_head"],
    )
    return mean, std, (h_n, c_n)


# ----------------------------------------------------------------------------
# Pure-JAX reference (matches PyTorch nn.LSTM semantics, gate order i,f,g,o).
# ----------------------------------------------------------------------------
def lstm_policy_reference(state, params, h0, c0):
    H = params["w_hh_t"].shape[0]
    A = params["w_head_t"].shape[1] // 2

    def step(carry, x_t):
        h, c = carry
        gates = x_t @ params["w_ih_t"] + h @ params["w_hh_t"] + params["bias"][0]
        i_g = jax.nn.sigmoid(gates[:, 0 * H:1 * H])
        f_g = jax.nn.sigmoid(gates[:, 1 * H:2 * H])
        g_g = jnp.tanh(gates[:, 2 * H:3 * H])
        o_g = jax.nn.sigmoid(gates[:, 3 * H:4 * H])
        c_new = f_g * c + i_g * g_g
        h_new = o_g * jnp.tanh(c_new)
        return (h_new, c_new), h_new

    (h_n, c_n), _ = lax.scan(step, (h0[0], c0[0]), jnp.transpose(state, (1, 0, 2)))
    head = h_n @ params["w_head_t"] + params["b_head"][0]
    mean = head[:, :A]
    std = jnp.exp(head[:, A:])
    return mean, std, (h_n[None], c_n[None])


# ----------------------------------------------------------------------------
# Deterministic parameter init (PyTorch-style U(-1/sqrt(H), 1/sqrt(H))).
# ----------------------------------------------------------------------------
def init_params(key, state_size, action_size, hidden_size):
    S, A, H = state_size, action_size, hidden_size
    bound = 1.0 / jnp.sqrt(H)
    ks = jax.random.split(key, 8)
    u = lambda k, shape: jax.random.uniform(k, shape, jnp.float32, -bound, bound)
    w_ih = u(ks[0], (4 * H, S))
    w_hh = u(ks[1], (4 * H, H))
    b_ih = u(ks[2], (4 * H,))
    b_hh = u(ks[3], (4 * H,))
    w_mean = u(ks[4], (A, H))
    b_mean = u(ks[5], (A,))
    w_lstd = u(ks[6], (A, H))
    b_lstd = u(ks[7], (A,))
    return {
        "w_ih_t": w_ih.T,                                       # (S, 4H)
        "w_hh_t": w_hh.T,                                       # (H, 4H)
        "bias": (b_ih + b_hh)[None, :],                         # (1, 4H)
        "w_head_t": jnp.concatenate([w_mean.T, w_lstd.T], 1),   # (H, 2A)
        "b_head": jnp.concatenate([b_mean, b_lstd])[None, :],   # (1, 2A)
    }


if __name__ == "__main__":
    B, T, S, H, A = 2, 8, 6, 32, 4

    key = jax.random.PRNGKey(0)
    k_p, k_x, k_h, k_c = jax.random.split(key, 4)
    params = init_params(k_p, S, A, H)
    state = jax.random.normal(k_x, (B, T, S), jnp.float32)

    # hidden_state provided (init_hidden equivalent would be zeros of same shape)
    h0 = 0.1 * jax.random.normal(k_h, (1, B, H), jnp.float32)
    c0 = 0.1 * jax.random.normal(k_c, (1, B, H), jnp.float32)

    mean, std, (h_n, c_n) = lstm_policy_forward(state, params, h0, c0)
    jax.block_until_ready((mean, std, h_n, c_n))

    # Correctness check against pure-JAX reference
    mean_r, std_r, (h_r, c_r) = lstm_policy_reference(state, params, h0, c0)
    import numpy as np
    assert np.allclose(np.asarray(mean), np.asarray(mean_r), atol=1e-5), "mean mismatch"
    assert np.allclose(np.asarray(std), np.asarray(std_r), atol=1e-5), "std mismatch"
    assert np.allclose(np.asarray(h_n), np.asarray(h_r), atol=1e-5), "h_n mismatch"
    assert np.allclose(np.asarray(c_n), np.asarray(c_r), atol=1e-5), "c_n mismatch"

    print("KERNEL_OK")
</pallas_src>

<mosaic_0001>
module attributes {stable_mosaic.version = 11 : i64} {
  func.func @_lstm_policy_kernel(%arg0: i32, %arg1: memref<1x16x6xf32, #tpu.memory_space<vmem>>, %arg2: memref<1x2x32xf32, #tpu.memory_space<vmem>>, %arg3: memref<1x2x32xf32, #tpu.memory_space<vmem>>, %arg4: memref<6x128xf32, #tpu.memory_space<vmem>>, %arg5: memref<32x128xf32, #tpu.memory_space<vmem>>, %arg6: memref<1x128xf32, #tpu.memory_space<vmem>>, %arg7: memref<32x8xf32, #tpu.memory_space<vmem>>, %arg8: memref<1x8xf32, #tpu.memory_space<vmem>>, %arg9: memref<2x4xf32, #tpu.memory_space<vmem>>, %arg10: memref<2x4xf32, #tpu.memory_space<vmem>>, %arg11: memref<1x2x32xf32, #tpu.memory_space<vmem>>, %arg12: memref<1x2x32xf32, #tpu.memory_space<vmem>>, %arg13: memref<16x128xf32, #tpu.memory_space<vmem>>) attributes {dimension_semantics = [#tpu.dimension_semantics<parallel>], iteration_bounds = array<i64: 1>, scalar_prefetch = 0 : i64, scratch_operands = 1 : i64, tpu.core_type = #tpu.core_type<tc>, window_params = [{transform_indices = @transform_0, window_bounds = array<i64: 1, 16, 6>}, {transform_indices = @transform_1, window_bounds = array<i64: 1, 2, 32>}, {transform_indices = @transform_2, window_bounds = array<i64: 1, 2, 32>}, {pipeline_mode = #tpu.pipeline_mode<synchronous>, transform_indices = @transform_3, window_bounds = array<i64: 6, 128>}, {pipeline_mode = #tpu.pipeline_mode<synchronous>, transform_indices = @transform_4, window_bounds = array<i64: 32, 128>}, {pipeline_mode = #tpu.pipeline_mode<synchronous>, transform_indices = @transform_5, window_bounds = array<i64: 1, 128>}, {pipeline_mode = #tpu.pipeline_mode<synchronous>, transform_indices = @transform_6, window_bounds = array<i64: 32, 8>}, {pipeline_mode = #tpu.pipeline_mode<synchronous>, transform_indices = @transform_7, window_bounds = array<i64: 1, 8>}, {transform_indices = @transform_8, window_bounds = array<i64: 2, 4>}, {transform_indices = @transform_9, window_bounds = array<i64: 2, 4>}, {transform_indices = @transform_10, window_bounds = array<i64: 1, 2, 32>}, {transform_indices = @transform_11, window_bounds = array<i64: 1, 2, 32>}]} {
    %c0 = arith.constant 0 : index
    %c0_0 = arith.constant 0 : index
    %c0_1 = arith.constant 0 : index
    %0 = vector.load %arg1[%c0, %c0_0, %c0_1] : memref<1x16x6xf32, #tpu.memory_space<vmem>>, vector<1x16x6xf32>
    %1 = vector.shape_cast %0 : vector<1x16x6xf32> to vector<16x6xf32>
    %c0_2 = arith.constant 0 : index
    %c0_3 = arith.constant 0 : index
    %2 = vector.load %arg4[%c0_2, %c0_3] : memref<6x128xf32, #tpu.memory_space<vmem>>, vector<6x128xf32>
    %cst = arith.constant dense<0.000000e+00> : vector<16x128xf32>
    %3 = tpu.matmul %1, %2, %cst {dimension_numbers = #tpu.dot_dimension_numbers<[1], [0], [0], [1], [0, 0, 1, 1], [], []>} : vector<16x6xf32>, vector<6x128xf32>, vector<16x128xf32> -> vector<16x128xf32>
    %c0_4 = arith.constant 0 : index
    %c0_5 = arith.constant 0 : index
    %4 = vector.load %arg6[%c0_4, %c0_5] : memref<1x128xf32, #tpu.memory_space<vmem>>, vector<1x128xf32>
    %5 = vector.broadcast %4 : vector<1x128xf32> to vector<16x128xf32>
    %6 = arith.addf %3, %5 : vector<16x128xf32>
    %c0_6 = arith.constant 0 : index
    %c0_7 = arith.constant 0 : index
    %7 = vector.load %arg13[%c0_6, %c0_7] : memref<16x128xf32, #tpu.memory_space<vmem>>, vector<16x128xf32>
    tpu.vector_store %arg13[%c0_6, %c0_7], %6 {strides = array<i32>} : memref<16x128xf32, #tpu.memory_space<vmem>>, vector<16x128xf32>,
    %c0_8 = arith.constant 0 : index
    %c0_9 = arith.constant 0 : index
    %8 = vector.load %arg5[%c0_8, %c0_9] : memref<32x128xf32, #tpu.memory_space<vmem>>, vector<32x128xf32>
    %9 = tpu.iota {dimensions = array<i32: 1>} : vector<2x128xi32>
    %c64_i32 = arith.constant 64 : i32
    %10 = vector.broadcast %c64_i32 : i32 to vector<2x128xi32>
    %11 = arith.cmpi sge, %9, %10 : vector<2x128xi32>
    %c96_i32 = arith.constant 96 : i32
    %12 = vector.broadcast %c96_i32 : i32 to vector<2x128xi32>
    %13 = arith.cmpi slt, %9, %12 : vector<2x128xi32>
    %14 = arith.andi %11, %13 : vector<2x128xi1>
    %c0_10 = arith.constant 0 : index
    %c0_11 = arith.constant 0 : index
    %c0_12 = arith.constant 0 : index
    %15 = vector.load %arg2[%c0_10, %c0_11, %c0_12] : memref<1x2x32xf32, #tpu.memory_space<vmem>>, vector<1x2x32xf32>
    %16 = vector.shape_cast %15 : vector<1x2x32xf32> to vector<2x32xf32>
    %c0_13 = arith.constant 0 : index
    %c0_14 = arith.constant 0 : index
    %c0_15 = arith.constant 0 : index
    %17 = vector.load %arg3[%c0_13, %c0_14, %c0_15] : memref<1x2x32xf32, #tpu.memory_space<vmem>>, vector<1x2x32xf32>
    %18 = vector.shape_cast %17 : vector<1x2x32xf32> to vector<2x32xf32>
    %c0_16 = arith.constant 0 : index
    %c0_17 = arith.constant 0 : index
    %19 = vector.load %arg13[%c0_16, %c0_17] : memref<16x128xf32, #tpu.memory_space<vmem>>, vector<2x128xf32>
    %cst_18 = arith.constant dense<0.000000e+00> : vector<2x128xf32>
    %20 = tpu.matmul %16, %8, %cst_18 {dimension_numbers = #tpu.dot_dimension_numbers<[1], [0], [0], [1], [0, 0, 1, 1], [], []>} : vector<2x32xf32>, vector<32x128xf32>, vector<2x128xf32> -> vector<2x128xf32>
    %21 = arith.addf %19, %20 : vector<2x128xf32>
    %22 = math.tanh %21 : vector<2x128xf32>
    %23 = arith.negf %21 : vector<2x128xf32>
    %24 = math.exp %23 : vector<2x128xf32>
    %cst_19 = arith.constant 1.000000e+00 : f32
    %25 = vector.broadcast %cst_19 : f32 to vector<2x128xf32>
    %26 = arith.addf %25, %24 : vector<2x128xf32>
    %27 = arith.divf %25, %26 : vector<2x128xf32>
    %28 = arith.select %14, %22, %27 : vector<2x128xi1>, vector<2x128xf32>
    %29 = vector.extract_strided_slice %28 {offsets = [0, 0], sizes = [2, 32], strides = [1, 1]} : vector<2x128xf32> to vector<2x32xf32>
    %30 = vector.extract_strided_slice %28 {offsets = [0, 32], sizes = [2, 32], strides = [1, 1]} : vector<2x128xf32> to vector<2x32xf32>
    %31 = vector.extract_strided_slice %28 {offsets = [0, 64], sizes = [2, 32], strides = [1, 1]} : vector<2x128xf32> to vector<2x32xf32>
    %32 = vector.extract_strided_slice %28 {offsets = [0, 96], sizes = [2, 32], strides = [1, 1]} : vector<2x128xf32> to vector<2x32xf32>
    %33 = arith.mulf %30, %18 : vector<2x32xf32>
    %34 = arith.mulf %29, %31 : vector<2x32xf32>
    %35 = arith.addf %33, %34 : vector<2x32xf32>
    %36 = math.tanh %35 : vector<2x32xf32>
    %37 = arith.mulf %32, %36 : vector<2x32xf32>
    %c2 = arith.constant 2 : index
    %c0_20 = arith.constant 0 : index
    %38 = vector.load %arg13[%c2, %c0_20] : memref<16x128xf32, #tpu.memory_space<vmem>>, vector<2x128xf32>
    %cst_21 = arith.constant dense<0.000000e+00> : vector<2x128xf32>
    %39 = tpu.matmul %37, %8, %cst_21 {dimension_numbers = #tpu.dot_dimension_numbers<[1], [0], [0], [1], [0, 0, 1, 1], [], []>} : vector<2x32xf32>, vector<32x128xf32>, vector<2x128xf32> -> vector<2x128xf32>
    %40 = arith.addf %38, %39 : vector<2x128xf32>
    %41 = math.tanh %40 : vector<2x128xf32>
    %42 = arith.negf %40 : vector<2x128xf32>
    %43 = math.exp %42 : vector<2x128xf32>
    %cst_22 = arith.constant 1.000000e+00 : f32
    %44 = vector.broadcast %cst_22 : f32 to vector<2x128xf32>
    %45 = arith.addf %44, %43 : vector<2x128xf32>
    %46 = arith.divf %44, %45 : vector<2x128xf32>
    %47 = arith.select %14, %41, %46 : vector<2x128xi1>, vector<2x128xf32>
    %48 = vector.extract_strided_slice %47 {offsets = [0, 0], sizes = [2, 32], strides = [1, 1]} : vector<2x128xf32> to vector<2x32xf32>
    %49 = vector.extract_strided_slice %47 {offsets = [0, 32], sizes = [2, 32], strides = [1, 1]} : vector<2x128xf32> to vector<2x32xf32>
    %50 = vector.extract_strided_slice %47 {offsets = [0, 64], sizes = [2, 32], strides = [1, 1]} : vector<2x128xf32> to vector<2x32xf32>
    %51 = vector.extract_strided_slice %47 {offsets = [0, 96], sizes = [2, 32], strides = [1, 1]} : vector<2x128xf32> to vector<2x32xf32>
    %52 = arith.mulf %49, %35 : vector<2x32xf32>
    %53 = arith.mulf %48, %50 : vector<2x32xf32>
    %54 = arith.addf %52, %53 : vector<2x32xf32>
    %55 = math.tanh %54 : vector<2x32xf32>
    %56 = arith.mulf %51, %55 : vector<2x32xf32>
    %c4 = arith.constant 4 : index
    %c0_23 = arith.constant 0 : index
    %57 = vector.load %arg13[%c4, %c0_23] : memref<16x128xf32, #tpu.memory_space<vmem>>, vector<2x128xf32>
    %cst_24 = arith.constant dense<0.000000e+00> : vector<2x128xf32>
    %58 = tpu.matmul %56, %8, %cst_24 {dimension_numbers = #tpu.dot_dimension_numbers<[1], [0], [0], [1], [0, 0, 1, 1], [], []>} : vector<2x32xf32>, vector<32x128xf32>, vector<2x128xf32> -> vector<2x128xf32>
    %59 = arith.addf %57, %58 : vector<2x128xf32>
    %60 = math.tanh %59 : vector<2x128xf32>
    %61 = arith.negf %59 : vector<2x128xf32>
    %62 = math.exp %61 : vector<2x128xf32>
    %cst_25 = arith.constant 1.000000e+00 : f32
    %63 = vector.broadcast %cst_25 : f32 to vector<2x128xf32>
    %64 = arith.addf %63, %62 : vector<2x128xf32>
    %65 = arith.divf %63, %64 : vector<2x128xf32>
    %66 = arith.select %14, %60, %65 : vector<2x128xi1>, vector<2x128xf32>
    %67 = vector.extract_strided_slice %66 {offsets = [0, 0], sizes = [2, 32], strides = [1, 1]} : vector<2x128xf32> to vector<2x32xf32>
    %68 = vector.extract_strided_slice %66 {offsets = [0, 32], sizes = [2, 32], strides = [1, 1]} : vector<2x128xf32> to vector<2x32xf32>
    %69 = vector.extract_strided_slice %66 {offsets = [0, 64], sizes = [2, 32], strides = [1, 1]} : vector<2x128xf32> to vector<2x32xf32>
    %70 = vector.extract_strided_slice %66 {offsets = [0, 96], sizes = [2, 32], strides = [1, 1]} : vector<2x128xf32> to vector<2x32xf32>
    %71 = arith.mulf %68, %54 : vector<2x32xf32>
    %72 = arith.mulf %67, %69 : vector<2x32xf32>
    %73 = arith.addf %71, %72 : vector<2x32xf32>
    %74 = math.tanh %73 : vector<2x32xf32>
    %75 = arith.mulf %70, %74 : vector<2x32xf32>
    %c6 = arith.constant 6 : index
    %c0_26 = arith.constant 0 : index
    %76 = vector.load %arg13[%c6, %c0_26] : memref<16x128xf32, #tpu.memory_space<vmem>>, vector<2x128xf32>
    %cst_27 = arith.constant dense<0.000000e+00> : vector<2x128xf32>
    %77 = tpu.matmul %75, %8, %cst_27 {dimension_numbers = #tpu.dot_dimension_numbers<[1], [0], [0], [1], [0, 0, 1, 1], [], []>} : vector<2x32xf32>, vector<32x128xf32>, vector<2x128xf32> -> vector<2x128xf32>
    %78 = arith.addf %76, %77 : vector<2x128xf32>
    %79 = math.tanh %78 : vector<2x128xf32>
    %80 = arith.negf %78 : vector<2x128xf32>
    %81 = math.exp %80 : vector<2x128xf32>
    %cst_28 = arith.constant 1.000000e+00 : f32
    %82 = vector.broadcast %cst_28 : f32 to vector<2x128xf32>
    %83 = arith.addf %82, %81 : vector<2x128xf32>
    %84 = arith.divf %82, %83 : vector<2x128xf32>
    %85 = arith.select %14, %79, %84 : vector<2x128xi1>, vector<2x128xf32>
    %86 = vector.extract_strided_slice %85 {offsets = [0, 0], sizes = [2, 32], strides = [1, 1]} : vector<2x128xf32> to vector<2x32xf32>
    %87 = vector.extract_strided_slice %85 {offsets = [0, 32], sizes = [2, 32], strides = [1, 1]} : vector<2x128xf32> to vector<2x32xf32>
    %88 = vector.extract_strided_slice %85 {offsets = [0, 64], sizes = [2, 32], strides = [1, 1]} : vector<2x128xf32> to vector<2x32xf32>
    %89 = vector.extract_strided_slice %85 {offsets = [0, 96], sizes = [2, 32], strides = [1, 1]} : vector<2x128xf32> to vector<2x32xf32>
    %90 = arith.mulf %87, %73 : vector<2x32xf32>
    %91 = arith.mulf %86, %88 : vector<2x32xf32>
    %92 = arith.addf %90, %91 : vector<2x32xf32>
    %93 = math.tanh %92 : vector<2x32xf32>
    %94 = arith.mulf %89, %93 : vector<2x32xf32>
    %c8 = arith.constant 8 : index
    %c0_29 = arith.constant 0 : index
    %95 = vector.load %arg13[%c8, %c0_29] : memref<16x128xf32, #tpu.memory_space<vmem>>, vector<2x128xf32>
    %cst_30 = arith.constant dense<0.000000e+00> : vector<2x128xf32>
    %96 = tpu.matmul %94, %8, %cst_30 {dimension_numbers = #tpu.dot_dimension_numbers<[1], [0], [0], [1], [0, 0, 1, 1], [], []>} : vector<2x32xf32>, vector<32x128xf32>, vector<2x128xf32> -> vector<2x128xf32>
    %97 = arith.addf %95, %96 : vector<2x128xf32>
    %98 = math.tanh %97 : vector<2x128xf32>
    %99 = arith.negf %97 : vector<2x128xf32>
    %100 = math.exp %99 : vector<2x128xf32>
    %cst_31 = arith.constant 1.000000e+00 : f32
    %101 = vector.broadcast %cst_31 : f32 to vector<2x128xf32>
    %102 = arith.addf %101, %100 : vector<2x128xf32>
    %103 = arith.divf %101, %102 : vector<2x128xf32>
    %104 = arith.select %14, %98, %103 : vector<2x128xi1>, vector<2x128xf32>
    %105 = vector.extract_strided_slice %104 {offsets = [0, 0], sizes = [2, 32], strides = [1, 1]} : vector<2x128xf32> to vector<2x32xf32>
    %106 = vector.extract_strided_slice %104 {offsets = [0, 32], sizes = [2, 32], strides = [1, 1]} : vector<2x128xf32> to vector<2x32xf32>
    %107 = vector.extract_strided_slice %104 {offsets = [0, 64], sizes = [2, 32], strides = [1, 1]} : vector<2x128xf32> to vector<2x32xf32>
    %108 = vector.extract_strided_slice %104 {offsets = [0, 96], sizes = [2, 32], strides = [1, 1]} : vector<2x128xf32> to vector<2x32xf32>
    %109 = arith.mulf %106, %92 : vector<2x32xf32>
    %110 = arith.mulf %105, %107 : vector<2x32xf32>
    %111 = arith.addf %109, %110 : vector<2x32xf32>
    %112 = math.tanh %111 : vector<2x32xf32>
    %113 = arith.mulf %108, %112 : vector<2x32xf32>
    %c10 = arith.constant 10 : index
    %c0_32 = arith.constant 0 : index
    %114 = vector.load %arg13[%c10, %c0_32] : memref<16x128xf32, #tpu.memory_space<vmem>>, vector<2x128xf32>
    %cst_33 = arith.constant dense<0.000000e+00> : vector<2x128xf32>
    %115 = tpu.matmul %113, %8, %cst_33 {dimension_numbers = #tpu.dot_dimension_numbers<[1], [0], [0], [1], [0, 0, 1, 1], [], []>} : vector<2x32xf32>, vector<32x128xf32>, vector<2x128xf32> -> vector<2x128xf32>
    %116 = arith.addf %114, %115 : vector<2x128xf32>
    %117 = math.tanh %116 : vector<2x128xf32>
    %118 = arith.negf %116 : vector<2x128xf32>
    %119 = math.exp %118 : vector<2x128xf32>
    %cst_34 = arith.constant 1.000000e+00 : f32
    %120 = vector.broadcast %cst_34 : f32 to vector<2x128xf32>
    %121 = arith.addf %120, %119 : vector<2x128xf32>
    %122 = arith.divf %120, %121 : vector<2x128xf32>
    %123 = arith.select %14, %117, %122 : vector<2x128xi1>, vector<2x128xf32>
    %124 = vector.extract_strided_slice %123 {offsets = [0, 0], sizes = [2, 32], strides = [1, 1]} : vector<2x128xf32> to vector<2x32xf32>
    %125 = vector.extract_strided_slice %123 {offsets = [0, 32], sizes = [2, 32], strides = [1, 1]} : vector<2x128xf32> to vector<2x32xf32>
    %126 = vector.extract_strided_slice %123 {offsets = [0, 64], sizes = [2, 32], strides = [1, 1]} : vector<2x128xf32> to vector<2x32xf32>
    %127 = vector.extract_strided_slice %123 {offsets = [0, 96], sizes = [2, 32], strides = [1, 1]} : vector<2x128xf32> to vector<2x32xf32>
    %128 = arith.mulf %125, %111 : vector<2x32xf32>
    %129 = arith.mulf %124, %126 : vector<2x32xf32>
    %130 = arith.addf %128, %129 : vector<2x32xf32>
    %131 = math.tanh %130 : vector<2x32xf32>
    %132 = arith.mulf %127, %131 : vector<2x32xf32>
    %c12 = arith.constant 12 : index
    %c0_35 = arith.constant 0 : index
    %133 = vector.load %arg13[%c12, %c0_35] : memref<16x128xf32, #tpu.memory_space<vmem>>, vector<2x128xf32>
    %cst_36 = arith.constant dense<0.000000e+00> : vector<2x128xf32>
    %134 = tpu.matmul %132, %8, %cst_36 {dimension_numbers = #tpu.dot_dimension_numbers<[1], [0], [0], [1], [0, 0, 1, 1], [], []>} : vector<2x32xf32>, vector<32x128xf32>, vector<2x128xf32> -> vector<2x128xf32>
    %135 = arith.addf %133, %134 : vector<2x128xf32>
    %136 = math.tanh %135 : vector<2x128xf32>
    %137 = arith.negf %135 : vector<2x128xf32>
    %138 = math.exp %137 : vector<2x128xf32>
    %cst_37 = arith.constant 1.000000e+00 : f32
    %139 = vector.broadcast %cst_37 : f32 to vector<2x128xf32>
    %140 = arith.addf %139, %138 : vector<2x128xf32>
    %141 = arith.divf %139, %140 : vector<2x128xf32>
    %142 = arith.select %14, %136, %141 : vector<2x128xi1>, vector<2x128xf32>
    %143 = vector.extract_strided_slice %142 {offsets = [0, 0], sizes = [2, 32], strides = [1, 1]} : vector<2x128xf32> to vector<2x32xf32>
    %144 = vector.extract_strided_slice %142 {offsets = [0, 32], sizes = [2, 32], strides = [1, 1]} : vector<2x128xf32> to vector<2x32xf32>
    %145 = vector.extract_strided_slice %142 {offsets = [0, 64], sizes = [2, 32], strides = [1, 1]} : vector<2x128xf32> to vector<2x32xf32>
    %146 = vector.extract_strided_slice %142 {offsets = [0, 96], sizes = [2, 32], strides = [1, 1]} : vector<2x128xf32> to vector<2x32xf32>
    %147 = arith.mulf %144, %130 : vector<2x32xf32>
    %148 = arith.mulf %143, %145 : vector<2x32xf32>
    %149 = arith.addf %147, %148 : vector<2x32xf32>
    %150 = math.tanh %149 : vector<2x32xf32>
    %151 = arith.mulf %146, %150 : vector<2x32xf32>
    %c14 = arith.constant 14 : index
    %c0_38 = arith.constant 0 : index
    %152 = vector.load %arg13[%c14, %c0_38] : memref<16x128xf32, #tpu.memory_space<vmem>>, vector<2x128xf32>
    %cst_39 = arith.constant dense<0.000000e+00> : vector<2x128xf32>
    %153 = tpu.matmul %151, %8, %cst_39 {dimension_numbers = #tpu.dot_dimension_numbers<[1], [0], [0], [1], [0, 0, 1, 1], [], []>} : vector<2x32xf32>, vector<32x128xf32>, vector<2x128xf32> -> vector<2x128xf32>
    %154 = arith.addf %152, %153 : vector<2x128xf32>
    %155 = math.tanh %154 : vector<2x128xf32>
    %156 = arith.negf %154 : vector<2x128xf32>
    %157 = math.exp %156 : vector<2x128xf32>
    %cst_40 = arith.constant 1.000000e+00 : f32
    %158 = vector.broadcast %cst_40 : f32 to vector<2x128xf32>
    %159 = arith.addf %158, %157 : vector<2x128xf32>
    %160 = arith.divf %158, %159 : vector<2x128xf32>
    %161 = arith.select %14, %155, %160 : vector<2x128xi1>, vector<2x128xf32>
    %162 = vector.extract_strided_slice %161 {offsets = [0, 0], sizes = [2, 32], strides = [1, 1]} : vector<2x128xf32> to vector<2x32xf32>
    %163 = vector.extract_strided_slice %161 {offsets = [0, 32], sizes = [2, 32], strides = [1, 1]} : vector<2x128xf32> to vector<2x32xf32>
    %164 = vector.extract_strided_slice %161 {offsets = [0, 64], sizes = [2, 32], strides = [1, 1]} : vector<2x128xf32> to vector<2x32xf32>
    %165 = vector.extract_strided_slice %161 {offsets = [0, 96], sizes = [2, 32], strides = [1, 1]} : vector<2x128xf32> to vector<2x32xf32>
    %166 = arith.mulf %163, %149 : vector<2x32xf32>
    %167 = arith.mulf %162, %164 : vector<2x32xf32>
    %168 = arith.addf %166, %167 : vector<2x32xf32>
    %169 = math.tanh %168 : vector<2x32xf32>
    %170 = arith.mulf %165, %169 : vector<2x32xf32>
    %c0_41 = arith.constant 0 : index
    %c0_42 = arith.constant 0 : index
    %171 = vector.load %arg7[%c0_41, %c0_42] : memref<32x8xf32, #tpu.memory_space<vmem>>, vector<32x8xf32>
    %cst_43 = arith.constant dense<0.000000e+00> : vector<2x8xf32>
    %172 = tpu.matmul %170, %171, %cst_43 {dimension_numbers = #tpu.dot_dimension_numbers<[1], [0], [0], [1], [0, 0, 1, 1], [], []>} : vector<2x32xf32>, vector<32x8xf32>, vector<2x8xf32> -> vector<2x8xf32>
    %c0_44 = arith.constant 0 : index
    %c0_45 = arith.constant 0 : index
    %173 = vector.load %arg8[%c0_44, %c0_45] : memref<1x8xf32, #tpu.memory_space<vmem>>, vector<1x8xf32>
    %174 = vector.broadcast %173 : vector<1x8xf32> to vector<2x8xf32>
    %175 = arith.addf %172, %174 : vector<2x8xf32>
    %176 = vector.extract_strided_slice %175 {offsets = [0, 0], sizes = [2, 4], strides = [1, 1]} : vector<2x8xf32> to vector<2x4xf32>
    %c0_46 = arith.constant 0 : index
    %c0_47 = arith.constant 0 : index
    %177 = vector.load %arg9[%c0_46, %c0_47] : memref<2x4xf32, #tpu.memory_space<vmem>>, vector<2x4xf32>
    tpu.vector_store %arg9[%c0_46, %c0_47], %176 {strides = array<i32>} : memref<2x4xf32, #tpu.memory_space<vmem>>, vector<2x4xf32>,
    %178 = vector.extract_strided_slice %175 {offsets = [0, 4], sizes = [2, 4], strides = [1, 1]} : vector<2x8xf32> to vector<2x4xf32>
    %179 = math.exp %178 : vector<2x4xf32>
    %c0_48 = arith.constant 0 : index
    %c0_49 = arith.constant 0 : index
    %180 = vector.load %arg10[%c0_48, %c0_49] : memref<2x4xf32, #tpu.memory_space<vmem>>, vector<2x4xf32>
    tpu.vector_store %arg10[%c0_48, %c0_49], %179 {strides = array<i32>} : memref<2x4xf32, #tpu.memory_space<vmem>>, vector<2x4xf32>,
    %c0_50 = arith.constant 0 : index
    %c0_51 = arith.constant 0 : index
    %c0_52 = arith.constant 0 : index
    %181 = vector.load %arg11[%c0_50, %c0_51, %c0_52] : memref<1x2x32xf32, #tpu.memory_space<vmem>>, vector<1x2x32xf32>
    %182 = vector.shape_cast %181 : vector<1x2x32xf32> to vector<2x32xf32>
    %183 = vector.shape_cast %170 : vector<2x32xf32> to vector<1x2x32xf32>
    tpu.vector_store %arg11[%c0_50, %c0_51, %c0_52], %183 {strides = array<i32>} : memref<1x2x32xf32, #tpu.memory_space<vmem>>, vector<1x2x32xf32>,
    %c0_53 = arith.constant 0 : index
    %c0_54 = arith.constant 0 : index
    %c0_55 = arith.constant 0 : index
    %184 = vector.load %arg12[%c0_53, %c0_54, %c0_55] : memref<1x2x32xf32, #tpu.memory_space<vmem>>, vector<1x2x32xf32>
    %185 = vector.shape_cast %184 : vector<1x2x32xf32> to vector<2x32xf32>
    %186 = vector.shape_cast %168 : vector<2x32xf32> to vector<1x2x32xf32>
    tpu.vector_store %arg12[%c0_53, %c0_54, %c0_55], %186 {strides = array<i32>} : memref<1x2x32xf32, #tpu.memory_space<vmem>>, vector<1x2x32xf32>,
    return
  }
  func.func @transform_0(%arg0: i32) -> (i32, i32, i32) {
    %c0_i32 = arith.constant 0 : i32
    %c0_i32_0 = arith.constant 0 : i32
    %c0_i32_1 = arith.constant 0 : i32
    return %arg0, %c0_i32, %c0_i32_0 : i32, i32, i32
  }
  func.func @transform_1(%arg0: i32) -> (i32, i32, i32) {
    %c0_i32 = arith.constant 0 : i32
    %c0_i32_0 = arith.constant 0 : i32
    %c0_i32_1 = arith.constant 0 : i32
    return %c0_i32, %arg0, %c0_i32_0 : i32, i32, i32
  }
  func.func @transform_2(%arg0: i32) -> (i32, i32, i32) {
    %c0_i32 = arith.constant 0 : i32
    %c0_i32_0 = arith.constant 0 : i32
    %c0_i32_1 = arith.constant 0 : i32
    return %c0_i32, %arg0, %c0_i32_0 : i32, i32, i32
  }
  func.func @transform_3(%arg0: i32) -> (i32, i32) {
    %c0_i32 = arith.constant 0 : i32
    %c0_i32_0 = arith.constant 0 : i32
    %c0_i32_1 = arith.constant 0 : i32
    return %c0_i32, %c0_i32_0 : i32, i32
  }
  func.func @transform_4(%arg0: i32) -> (i32, i32) {
    %c0_i32 = arith.constant 0 : i32
    %c0_i32_0 = arith.constant 0 : i32
    %c0_i32_1 = arith.constant 0 : i32
    return %c0_i32, %c0_i32_0 : i32, i32
  }
  func.func @transform_5(%arg0: i32) -> (i32, i32) {
    %c0_i32 = arith.constant 0 : i32
    %c0_i32_0 = arith.constant 0 : i32
    %c0_i32_1 = arith.constant 0 : i32
    return %c0_i32, %c0_i32_0 : i32, i32
  }
  func.func @transform_6(%arg0: i32) -> (i32, i32) {
    %c0_i32 = arith.constant 0 : i32
    %c0_i32_0 = arith.constant 0 : i32
    %c0_i32_1 = arith.constant 0 : i32
    return %c0_i32, %c0_i32_0 : i32, i32
  }
  func.func @transform_7(%arg0: i32) -> (i32, i32) {
    %c0_i32 = arith.constant 0 : i32
    %c0_i32_0 = arith.constant 0 : i32
    %c0_i32_1 = arith.constant 0 : i32
    return %c0_i32, %c0_i32_0 : i32, i32
  }
  func.func @transform_8(%arg0: i32) -> (i32, i32) {
    %c0_i32 = arith.constant 0 : i32
    %c0_i32_0 = arith.constant 0 : i32
    return %arg0, %c0_i32 : i32, i32
  }
  func.func @transform_9(%arg0: i32) -> (i32, i32) {
    %c0_i32 = arith.constant 0 : i32
    %c0_i32_0 = arith.constant 0 : i32
    return %arg0, %c0_i32 : i32, i32
  }
  func.func @transform_10(%arg0: i32) -> (i32, i32, i32) {
    %c0_i32 = arith.constant 0 : i32
    %c0_i32_0 = arith.constant 0 : i32
    %c0_i32_1 = arith.constant 0 : i32
    return %c0_i32, %arg0, %c0_i32_0 : i32, i32, i32
  }
  func.func @transform_11(%arg0: i32) -> (i32, i32, i32) {
    %c0_i32 = arith.constant 0 : i32
    %c0_i32_0 = arith.constant 0 : i32
    %c0_i32_1 = arith.constant 0 : i32
    return %c0_i32, %arg0, %c0_i32_0 : i32, i32, i32
  }
}

</mosaic_0001>

<bundles_post_ra>
// kernel: lstm_policy_forward.1
= control target key start
LH: loop header
LB: loop body
LE: loop exit
PB: predicated region body
PF: predicated region fallthrough
CT: control target
= control target key end

     0   :  { %17 = vsyncpa [#allocation4], 0  ;;  %s1805_s0 = inlined_call_operand.vmem [shape: f32[1,16,6], index: 0, kind: input, shape index: {}]   ;;  %s1806_s1 = inlined_call_operand.vmem [shape: f32[1,2,32], index: 1, kind: input, shape index: {}]   ;;  %s1807_s2 = inlined_call_operand.vmem [shape: f32[1,2,32], index: 2, kind: input, shape index: {}]   ;;  %s1808_s3 = inlined_call_operand.vmem [shape: f32[6,128], index: 3, kind: input, shape index: {}]   ;;  %s1809_s4 = inlined_call_operand.vmem [shape: f32[32,128], index: 4, kind: input, shape index: {}]   ;;  %s1810_s5 = inlined_call_operand.vmem [shape: f32[1,128], index: 5, kind: input, shape index: {}]   ;;  %s1811_s6 = inlined_call_operand.vmem [shape: f32[32,8], index: 6, kind: input, shape index: {}]   ;;  %s1812_s7 = inlined_call_operand.vmem [shape: f32[1,8], index: 7, kind: input, shape index: {}]   ;;  %s1813_s8 = inlined_call_operand.hbm [shape: f32[2,4], index: 8, kind: output, shape index: {0}]   ;;  %s1814_s9 = inlined_call_operand.hbm [shape: f32[2,4], index: 9, kind: output, shape index: {1}]   ;;  %s1815_s10 = inlined_call_operand.hbm [shape: f32[1,2,32], index: 10, kind: output, shape index: {2}]   ;;  %s1816_s11 = inlined_call_operand.hbm [shape: f32[1,2,32], index: 11, kind: output, shape index: {3}]  }
   0x1   :  { %18 = vsyncpa [#allocation6], 0  ;;  %v38_v0 = vld [vmem:[%s1808_s3] sm:$0x3f]  ;;  %vm53_vm0 = vcmask 1045504   ;;  %vm46_vm1 = vcmask 48128  }
   0x2   :  { %v36_v1 = vld [vmem:[%s1805_s0] sm:$0xff]  ;;  %v37_v2 = vld [vmem:[%s1805_s0 + $0x8] sm:$0xff]  ;;  %1192 = vmatprep.subr.msk.mxu0 %vm53_vm0, %v38_v0  ;;  %v136_v5 = vld [vmem:[%s1809_s4 + $0x10] sm:$0xff]  ;;  %v1521_v6 = vmov 0.0|0.0  }
   0x3   :  { %1194 = vmatprep.mubr.msk.f32.mxu0 %vm46_vm1, %v36_v1  ;;  %v134_v3 = vld [vmem:[%s1809_s4] sm:$0xff]  ;;  %v135_v4 = vld [vmem:[%s1809_s4 + $0x8] sm:$0xff]  ;;  %1193 = vmatpush3.msk.msra.mxu0 %vm53_vm0, %v38_v0  ;;  %v137_v8 = vld [vmem:[%s1809_s4 + $0x18] sm:$0xff] }
   0x4   :  { %1296 = vmatprep.subr.bf16.mxu1 %v1521_v6  ;;  %v1611_v7 = vpack.c.bf16 %v135_v4, %v134_v3 }
   0x5   :  { %19 = vsyncpa [#allocation9], 0  ;;  %1195 = vmatmul.mubr.msk.f32.vlgmr.msra.gmra.mrb[0].mxu0 %vm46_vm1, %v37_v2  ;;  %vm1522_vm2 = vmmov 0   ;;  %v1523_v9 = vmov 0.0   ;;  %v1619_v10 = vpack.c.bf16 %v137_v8, %v136_v5  ;;  %1302 = vmatprep.subr.bf16.mxu0 %v1521_v6  ;;  %v143_v11 = vld [vmem:[%s1806_s1] sm:$0x3]  ;;  %v138_v23 = vlaneseq }
   0x6   :  { %1205 = vmatprep.mubr.msk.f32.mxu1 %vm1522_vm2, %v1523_v9  ;;  %1298 = vmatpush3.bf16.msra.mxu1 %v1611_v7  ;;  %vm146_vm3 = vcmask 261120   ;;  %v1122_v12 = vld [vmem:[%s1810_s5] ss:$0 sm:$0xff]  ;;  %s1524_s5 = smov 64   ;;  %s1525_s14 = smov 32   ;;  %v966_v26 = vld [vmem:[%s1811_s6 + $0x10] sm:$0xff] }
   0x7   :  { %1299 = vmatprep.subr.bf16.mxu1 %v1521_v6  ;;  %1304 = vmatpush3.bf16.msra.mxu0 %v1611_v7  ;;  %v139_v25 = vand.u32 127, %v138_v23  ;;  %v144_v30 = vld [vmem:[%s1807_s2] sm:$0x3]  ;;  %s1526_s22 = smov 96   ;;  %vm1060_vm7 = vcmask 254976   ;;  %vm1050_vm8 = vcmask 25600  }
   0x8   :  { %1305 = vmatprep.subr.bf16.mxu0 %v1521_v6  ;;  %1216 = vmatprep.mubr.msk.f32.mxu0 %vm1522_vm2, %v1523_v9  ;;  %s1527_s24 = smov [#allocation3]  }
   0x9   :  { %vm140_vm4 = vcmp.ge.s32.totalorder %v139_v25, 64  ;;  %vm141_vm5 = vcmp.lt.s32.totalorder %v139_v25, 96  ;;  %s1073_s25 = sshll.u32 %s1527_s24, 4  ;;  %s1074_s25 = int_to_ptr.vmem [resolvable:$true] %s1073_s25 }
   0xa   :  { %1301 = vmatpush3.bf16.msra.mxu1 %v1619_v10  ;;  %vm1644_vm6 = vmand %vm140_vm4, %vm141_vm5  ;;  %s1427_s26 = scalar_lea.vmem %s1074_s25, 32  ;;  %p1432_p1 = scmp.lt.s32.totalorder %s1074_s25, %s1074_s25 }
   0xb   :  { %1307 = vmatpush3.bf16.msra.mxu0 %v1619_v10  ;;  %1308 = vmatprep.subr.bf16.mxu1 %v1521_v6  ;;  %p1428_p0 = scmp.ne.s32.totalorder %s1074_s25, %s1427_s26  ;;  %p1433_p2 = scmp.lt.s32.totalorder %s1427_s26, %s1427_s26 }
   0xc   :  { %1314 = vmatprep.subr.bf16.mxu0 %v1521_v6 }
   0xd   :  { %1206 = vmatmul.mubr.msk.f32.vlgmr.msra.gmra.mrb[0].mxu1 %vm146_vm3, %v143_v11  ;;  %p1434_p3 = por %p1433_p2, %p1432_p1 }
   0xe   :  { %1310 = vmatpush3.bf16.msra.mxu1 %v1611_v7  ;;  %1227 = vmatprep.mubr.msk.f32.mxu1 %vm1522_vm2, %v1523_v9 }
   0xf   :  { %1311 = vmatprep.subr.bf16.mxu1 %v1521_v6  ;;  %p1435_p4 = pnand %p1434_p3, %p1428_p0 }
  0x12   :  { %1313 = vmatpush3.bf16.msra.mxu1 %v1619_v10 }
  0x13   :  { %1320 = vmatprep.subr.bf16.mxu1 %v1521_v6 }
  0xd8   :  { %v1196_v13 = vpop.f32.mrb[0].mxu0 }
  0xd9   :  { %v129_v14 = vadd.f32 %v1196_v13, %v1122_v12  ;;  %v123_v15 = vpop.f32.mrb[1].mxu0 }
  0xda   :  { %v124_v16 = vadd.f32 %v1122_v12, %v123_v15 }
  0xdb   :  { %133 = vst [vmem:[#allocation2 + $0x8] sm:$0xff] %v129_v14 }
  0xdc   :  { %132 = vst [vmem:[#allocation2] sm:$0xff] %v124_v16 }
  0xe0   :  { %v216_v17 = vpop.f32.mrb[0].mxu1 }
  0xe1   :  { %v1207_v18 = vpop.f32.mrb[1].mxu1 }
  0xe3   :  { %v145_v19 = vld [vmem:[#allocation2] sm:$0x3]  ;;  %v250_v41 = vld [vmem:[#allocation2 + $0x2] sm:$0x3]  ;;  %v352_v60 = vld [vmem:[#allocation2 + $0x4] sm:$0x3] }
  0xe4   :  { %v220_v20 = vadd.f32 %v216_v17, %v145_v19  ;;  %v454_v19 = vld [vmem:[#allocation2 + $0x6] sm:$0x3] }
  0xe6   :  { %v1127_v21 = vmul.f32 -1.442695, %v220_v20 }
  0xe8   :  { %1361 = vpow2.f32 %v1127_v21 }
  0xe9   :  { %1363 = vtanh.f32 %v220_v20 }
  0xf2   :  { %v1362_v22 = vpop.eup %1361 }
  0xf3   :  { %v225_v24 = vadd.f32 1.0, %v1362_v22  ;;  %v1364_v27 = vpop.eup %1363 }
  0xf5   :  { %1365 = vrcp.f32 %v225_v24 }
  0xff   :  { %v1366_v28 = vpop.eup %1365 }
 0x100   :  { %v228_v29 = vsel %vm1644_vm6, %v1364_v27, %v1366_v28 }
 0x101   :  { %235 = vrot.lane.b32.xlu0 %v228_v29, %s1524_s5 }
 0x105   :  { %230 = vrot.lane.b32.xlu0 %v144_v30, %s1525_s14 }
 0x173   :  { %v236_v31 = vpop.permute.xlu0 %235 }
 0x174   :  { %v238_v32 = vmul.f32 %v236_v31, %v228_v29 }
 0x176   :  { %240 = vrot.lane.b32.xlu1 %v238_v32, %s1525_s14 }
 0x177   :  { %v231_v33 = vpop.permute.xlu0 %230 }
 0x178   :  { %v233_v34 = vmul.f32 %v231_v33, %v228_v29 }
 0x1e8   :  { %v241_v35 = vpop.permute.xlu1 %240 }
 0x1e9   :  { %v243_v36 = vadd.f32 %v241_v35, %v233_v34 }
 0x1eb   :  { %1367 = vtanh.f32 %v243_v36 }
 0x1f5   :  { %v1368_v37 = vpop.eup %1367 }
 0x1f6   :  { %246 = vrot.lane.b32.xlu1 %v1368_v37, %s1524_s5 }
 0x268   :  { %v247_v38 = vpop.permute.xlu1 %246 }
 0x269   :  { %v249_v39 = vmul.f32 %v247_v38, %v228_v29 }
 0x26b   :  { %252 = vrot.lane.b32.xlu0 %v249_v39, %s1525_s14  ;;  %v556_v39 = vld [vmem:[#allocation2 + $0x8] sm:$0x3] }
 0x2dd   :  { %v253_v40 = vpop.permute.xlu0 %252 }
 0x2de   :  { %1217 = vmatmul.mubr.msk.f32.vlgmr.msra.gmra.mrb[2].mxu0 %vm146_vm3, %v253_v40 }
 0x2df   :  { %1316 = vmatpush3.bf16.msra.mxu0 %v1611_v7  ;;  %1238 = vmatprep.mubr.msk.f32.mxu0 %vm1522_vm2, %v1523_v9 }
 0x2e0   :  { %1317 = vmatprep.subr.bf16.mxu0 %v1521_v6 }
 0x2e3   :  { %1319 = vmatpush3.bf16.msra.mxu0 %v1619_v10 }
 0x2e4   :  { %1326 = vmatprep.subr.bf16.mxu0 %v1521_v6 }
 0x3b1   :  { %v322_v42 = vpop.f32.mrb[2].mxu0 }
 0x3b2   :  { %v326_v43 = vadd.f32 %v322_v42, %v250_v41  ;;  %v1218_v44 = vpop.f32.mrb[3].mxu0 }
 0x3b4   :  { %v1129_v45 = vmul.f32 -1.442695, %v326_v43 }
 0x3b6   :  { %1369 = vpow2.f32 %v1129_v45 }
 0x3b7   :  { %1371 = vtanh.f32 %v326_v43 }
 0x3c0   :  { %v1370_v46 = vpop.eup %1369 }
 0x3c1   :  { %v331_v47 = vadd.f32 1.0, %v1370_v46  ;;  %v1372_v48 = vpop.eup %1371 }
 0x3c3   :  { %1373 = vrcp.f32 %v331_v47 }
 0x3cd   :  { %v1374_v49 = vpop.eup %1373 }
 0x3ce   :  { %v334_v50 = vsel %vm1644_vm6, %v1372_v48, %v1374_v49 }
 0x3cf   :  { %337 = vrot.lane.b32.xlu1 %v334_v50, %s1524_s5  ;;  %v335_v53 = vmul.f32 %v334_v50, %v243_v36 }
 0x441   :  { %v338_v51 = vpop.permute.xlu1 %337 }
 0x442   :  { %v340_v52 = vmul.f32 %v338_v51, %v334_v50 }
 0x444   :  { %342 = vrot.lane.b32.xlu0 %v340_v52, %s1525_s14 }
 0x4b6   :  { %v343_v54 = vpop.permute.xlu0 %342 }
 0x4b7   :  { %v345_v55 = vadd.f32 %v343_v54, %v335_v53 }
 0x4b9   :  { %1375 = vtanh.f32 %v345_v55 }
 0x4c3   :  { %v1376_v56 = vpop.eup %1375 }
 0x4c4   :  { %348 = vrot.lane.b32.xlu1 %v1376_v56, %s1524_s5 }
 0x536   :  { %v349_v57 = vpop.permute.xlu1 %348 }
 0x537   :  { %v351_v58 = vmul.f32 %v349_v57, %v334_v50 }
 0x539   :  { %354 = vrot.lane.b32.xlu0 %v351_v58, %s1525_s14  ;;  %v658_v58 = vld [vmem:[#allocation2 + $0xa] sm:$0x3] }
 0x5ab   :  { %v355_v59 = vpop.permute.xlu0 %354 }
 0x5ac   :  { %1228 = vmatmul.mubr.msk.f32.vlgmr.msra.gmra.mrb[2].mxu1 %vm146_vm3, %v355_v59 }
 0x5ad   :  { %1322 = vmatpush3.bf16.msra.mxu1 %v1611_v7  ;;  %1249 = vmatprep.mubr.msk.f32.mxu1 %vm1522_vm2, %v1523_v9 }
 0x5ae   :  { %1323 = vmatprep.subr.bf16.mxu1 %v1521_v6 }
 0x5b1   :  { %1325 = vmatpush3.bf16.msra.mxu1 %v1619_v10 }
 0x5b2   :  { %1332 = vmatprep.subr.bf16.mxu1 %v1521_v6 }
 0x67f   :  { %v424_v61 = vpop.f32.mrb[2].mxu1 }
 0x680   :  { %v428_v62 = vadd.f32 %v424_v61, %v352_v60  ;;  %v1229_v63 = vpop.f32.mrb[3].mxu1 }
 0x682   :  { %v1131_v0 = vmul.f32 -1.442695, %v428_v62 }
 0x684   :  { %1377 = vpow2.f32 %v1131_v0 }
 0x685   :  { %1379 = vtanh.f32 %v428_v62 }
 0x68e   :  { %v1378_v1 = vpop.eup %1377 }
 0x68f   :  { %v433_v2 = vadd.f32 1.0, %v1378_v1  ;;  %v1380_v3 = vpop.eup %1379 }
 0x691   :  { %1381 = vrcp.f32 %v433_v2 }
 0x69b   :  { %v1382_v4 = vpop.eup %1381 }
 0x69c   :  { %v436_v5 = vsel %vm1644_vm6, %v1380_v3, %v1382_v4 }
 0x69d   :  { %439 = vrot.lane.b32.xlu1 %v436_v5, %s1524_s5  ;;  %v437_v12 = vmul.f32 %v436_v5, %v345_v55 }
 0x70f   :  { %v440_v8 = vpop.permute.xlu1 %439 }
 0x710   :  { %v442_v11 = vmul.f32 %v440_v8, %v436_v5 }
 0x712   :  { %444 = vrot.lane.b32.xlu0 %v442_v11, %s1525_s14 }
 0x784   :  { %v445_v13 = vpop.permute.xlu0 %444 }
 0x785   :  { %v447_v14 = vadd.f32 %v445_v13, %v437_v12 }
 0x787   :  { %1383 = vtanh.f32 %v447_v14 }
 0x791   :  { %v1384_v15 = vpop.eup %1383 }
 0x792   :  { %450 = vrot.lane.b32.xlu1 %v1384_v15, %s1524_s5  ;;  %v760_v15 = vld [vmem:[#allocation2 + $0xc] sm:$0x3] }
 0x804   :  { %v451_v16 = vpop.permute.xlu1 %450 }
 0x805   :  { %v453_v17 = vmul.f32 %v451_v16, %v436_v5 }
 0x807   :  { %456 = vrot.lane.b32.xlu0 %v453_v17, %s1525_s14 }
 0x879   :  { %v457_v18 = vpop.permute.xlu0 %456 }
 0x87a   :  { %1239 = vmatmul.mubr.msk.f32.vlgmr.msra.gmra.mrb[4].mxu0 %vm146_vm3, %v457_v18 }
 0x87b   :  { %1328 = vmatpush3.bf16.msra.mxu0 %v1611_v7  ;;  %1260 = vmatprep.mubr.msk.f32.mxu0 %vm1522_vm2, %v1523_v9 }
 0x87c   :  { %1329 = vmatprep.subr.bf16.mxu0 %v1521_v6 }
 0x87f   :  { %1331 = vmatpush3.bf16.msra.mxu0 %v1619_v10 }
 0x880   :  { %1338 = vmatprep.subr.bf16.mxu0 %v1521_v6 }
 0x94d   :  { %v526_v20 = vpop.f32.mrb[4].mxu0 }
 0x94e   :  { %v530_v21 = vadd.f32 %v526_v20, %v454_v19  ;;  %v1240_v22 = vpop.f32.mrb[5].mxu0 }
 0x950   :  { %v1133_v23 = vmul.f32 -1.442695, %v530_v21 }
 0x952   :  { %1385 = vpow2.f32 %v1133_v23 }
 0x953   :  { %1387 = vtanh.f32 %v530_v21 }
 0x95c   :  { %v1386_v24 = vpop.eup %1385 }
 0x95d   :  { %v535_v25 = vadd.f32 1.0, %v1386_v24  ;;  %v1388_v27 = vpop.eup %1387 }
 0x95f   :  { %1389 = vrcp.f32 %v535_v25 }
 0x969   :  { %v1390_v28 = vpop.eup %1389 }
 0x96a   :  { %v538_v29 = vsel %vm1644_vm6, %v1388_v27, %v1390_v28 }
 0x96b   :  { %541 = vrot.lane.b32.xlu1 %v538_v29, %s1524_s5  ;;  %v539_v32 = vmul.f32 %v538_v29, %v447_v14 }
 0x9dd   :  { %v542_v30 = vpop.permute.xlu1 %541 }
 0x9de   :  { %v544_v31 = vmul.f32 %v542_v30, %v538_v29 }
 0x9e0   :  { %546 = vrot.lane.b32.xlu0 %v544_v31, %s1525_s14 }
 0xa52   :  { %v547_v33 = vpop.permute.xlu0 %546 }
 0xa53   :  { %v549_v34 = vadd.f32 %v547_v33, %v539_v32 }
 0xa55   :  { %1391 = vtanh.f32 %v549_v34 }
 0xa5f   :  { %v1392_v35 = vpop.eup %1391 }
 0xa60   :  { %552 = vrot.lane.b32.xlu1 %v1392_v35, %s1524_s5 }
 0xad2   :  { %v553_v36 = vpop.permute.xlu1 %552 }
 0xad3   :  { %v555_v37 = vmul.f32 %v553_v36, %v538_v29 }
 0xad5   :  { %558 = vrot.lane.b32.xlu0 %v555_v37, %s1525_s14 }
 0xb47   :  { %v559_v38 = vpop.permute.xlu0 %558 }
 0xb48   :  { %1250 = vmatmul.mubr.msk.f32.vlgmr.msra.gmra.mrb[4].mxu1 %vm146_vm3, %v559_v38 }
 0xb49   :  { %1334 = vmatpush3.bf16.msra.mxu1 %v1611_v7  ;;  %1271 = vmatprep.mubr.msk.f32.mxu1 %vm1522_vm2, %v1523_v9 }
 0xb4a   :  { %1335 = vmatprep.subr.bf16.mxu1 %v1521_v6 }
 0xb4d   :  { %1337 = vmatpush3.bf16.msra.mxu1 %v1619_v10 }
 0xb4e   :  { %1344 = vmatprep.subr.bf16.mxu1 %v1521_v6 }
 0xc1b   :  { %v628_v40 = vpop.f32.mrb[4].mxu1 }
 0xc1c   :  { %v632_v41 = vadd.f32 %v628_v40, %v556_v39  ;;  %v1251_v42 = vpop.f32.mrb[5].mxu1 }
 0xc1e   :  { %v1135_v43 = vmul.f32 -1.442695, %v632_v41 }
 0xc20   :  { %1393 = vpow2.f32 %v1135_v43 }
 0xc21   :  { %1395 = vtanh.f32 %v632_v41 }
 0xc2a   :  { %v1394_v44 = vpop.eup %1393 }
 0xc2b   :  { %v637_v45 = vadd.f32 1.0, %v1394_v44  ;;  %v1396_v46 = vpop.eup %1395 }
 0xc2d   :  { %1397 = vrcp.f32 %v637_v45 }
 0xc37   :  { %v1398_v47 = vpop.eup %1397 }
 0xc38   :  { %v640_v48 = vsel %vm1644_vm6, %v1396_v46, %v1398_v47 }
 0xc39   :  { %643 = vrot.lane.b32.xlu1 %v640_v48, %s1524_s5  ;;  %v641_v51 = vmul.f32 %v640_v48, %v549_v34  ;;  %v862_v34 = vld [vmem:[#allocation2 + $0xe] sm:$0x3] }
 0xcab   :  { %v644_v49 = vpop.permute.xlu1 %643 }
 0xcac   :  { %v646_v50 = vmul.f32 %v644_v49, %v640_v48  ;;  %v964_v49 = vld [vmem:[%s1811_s6] sm:$0xff] }
 0xcae   :  { %648 = vrot.lane.b32.xlu0 %v646_v50, %s1525_s14  ;;  %v965_v50 = vld [vmem:[%s1811_s6 + $0x8] sm:$0xff] }
 0xd20   :  { %v649_v52 = vpop.permute.xlu0 %648 }
 0xd21   :  { %v651_v53 = vadd.f32 %v649_v52, %v641_v51  ;;  %v1345_v51 = vpack.c.bf16 %v965_v50, %v964_v49  ;;  %v967_v52 = vld [vmem:[%s1811_s6 + $0x18] sm:$0xff] }
 0xd23   :  { %1399 = vtanh.f32 %v651_v53 }
 0xd2d   :  { %v1400_v54 = vpop.eup %1399 }
 0xd2e   :  { %654 = vrot.lane.b32.xlu1 %v1400_v54, %s1524_s5 }
 0xda0   :  { %v655_v55 = vpop.permute.xlu1 %654 }
 0xda1   :  { %v657_v56 = vmul.f32 %v655_v55, %v640_v48 }
 0xda3   :  { %660 = vrot.lane.b32.xlu0 %v657_v56, %s1525_s14 }
 0xe15   :  { %v661_v57 = vpop.permute.xlu0 %660 }
 0xe16   :  { %1261 = vmatmul.mubr.msk.f32.vlgmr.msra.gmra.mrb[6].mxu0 %vm146_vm3, %v661_v57 }
 0xe17   :  { %1340 = vmatpush3.bf16.msra.mxu0 %v1611_v7  ;;  %1282 = vmatprep.mubr.msk.f32.mxu0 %vm1522_vm2, %v1523_v9 }
 0xe18   :  { %1341 = vmatprep.subr.bf16.mxu0 %v1521_v6 }
 0xe1b   :  { %1343 = vmatpush3.bf16.msra.mxu0 %v1619_v10 }
 0xee9   :  { %v730_v59 = vpop.f32.mrb[6].mxu0 }
 0xeea   :  { %v734_v60 = vadd.f32 %v730_v59, %v658_v58  ;;  %v1262_v61 = vpop.f32.mrb[7].mxu0 }
 0xeec   :  { %v1137_v62 = vmul.f32 -1.442695, %v734_v60 }
 0xeee   :  { %1401 = vpow2.f32 %v1137_v62 }
 0xeef   :  { %1403 = vtanh.f32 %v734_v60 }
 0xef8   :  { %v1402_v63 = vpop.eup %1401 }
 0xef9   :  { %v739_v0 = vadd.f32 1.0, %v1402_v63  ;;  %v1404_v1 = vpop.eup %1403 }
 0xefb   :  { %1405 = vrcp.f32 %v739_v0 }
 0xf05   :  { %v1406_v2 = vpop.eup %1405 }
 0xf06   :  { %v742_v7 = vsel %vm1644_vm6, %v1404_v1, %v1406_v2 }
 0xf07   :  { %745 = vrot.lane.b32.xlu1 %v742_v7, %s1524_s5  ;;  %v743_v10 = vmul.f32 %v742_v7, %v651_v53  ;;  %v1348_v53 = vpack.c.bf16 %v967_v52, %v966_v26 }
 0xf79   :  { %v746_v3 = vpop.permute.xlu1 %745 }
 0xf7a   :  { %v748_v4 = vmul.f32 %v746_v3, %v742_v7 }
 0xf7c   :  { %750 = vrot.lane.b32.xlu0 %v748_v4, %s1525_s14 }
 0xfee   :  { %v751_v5 = vpop.permute.xlu0 %750 }
 0xfef   :  { %v753_v8 = vadd.f32 %v751_v5, %v743_v10 }
 0xff1   :  { %1407 = vtanh.f32 %v753_v8 }
 0xffb   :  { %v1408_v11 = vpop.eup %1407 }
 0xffc   :  { %756 = vrot.lane.b32.xlu1 %v1408_v11, %s1524_s5 }
0x106e   :  { %v757_v12 = vpop.permute.xlu1 %756 }
0x106f   :  { %v759_v13 = vmul.f32 %v757_v12, %v742_v7 }
0x1071   :  { %762 = vrot.lane.b32.xlu0 %v759_v13, %s1525_s14 }
0x10e3   :  { %v763_v14 = vpop.permute.xlu0 %762 }
0x10e4   :  { %1272 = vmatmul.mubr.msk.f32.vlgmr.msra.gmra.mrb[6].mxu1 %vm146_vm3, %v763_v14 }
0x10e5   :  { %1293 = vmatprep.mubr.msk.f32.mxu1 %vm1522_vm2, %v1523_v9  ;;  %1346 = vmatpush3.bf16.msra.mxu1 %v1345_v51 }
0x10e6   :  { %1347 = vmatprep.subr.bf16.mxu1 %v1521_v6  ;;  %v1142_v6 = vld [vmem:[%s1812_s7] ss:$0 sm:$0xff] }
0x10e9   :  { %1349 = vmatpush3.bf16.msra.mxu1 %v1348_v53 }
0x11b7   :  { %v832_v16 = vpop.f32.mrb[6].mxu1 }
0x11b8   :  { %v836_v17 = vadd.f32 %v832_v16, %v760_v15  ;;  %v1273_v18 = vpop.f32.mrb[7].mxu1 }
0x11ba   :  { %v1139_v19 = vmul.f32 -1.442695, %v836_v17 }
0x11bc   :  { %1409 = vpow2.f32 %v1139_v19 }
0x11bd   :  { %1411 = vtanh.f32 %v836_v17 }
0x11c6   :  { %v1410_v20 = vpop.eup %1409 }
0x11c7   :  { %v841_v21 = vadd.f32 1.0, %v1410_v20  ;;  %v1412_v22 = vpop.eup %1411 }
0x11c9   :  { %1413 = vrcp.f32 %v841_v21 }
0x11d3   :  { %v1414_v23 = vpop.eup %1413 }
0x11d4   :  { %v844_v24 = vsel %vm1644_vm6, %v1412_v22, %v1414_v23 }
0x11d5   :  { %847 = vrot.lane.b32.xlu1 %v844_v24, %s1524_s5  ;;  %v845_v9 = vmul.f32 %v844_v24, %v753_v8 }
0x1247   :  { %v848_v25 = vpop.permute.xlu1 %847 }
0x1248   :  { %v850_v27 = vmul.f32 %v848_v25, %v844_v24 }
0x124a   :  { %852 = vrot.lane.b32.xlu0 %v850_v27, %s1525_s14 }
0x12bc   :  { %v853_v28 = vpop.permute.xlu0 %852 }
0x12bd   :  { %v855_v29 = vadd.f32 %v853_v28, %v845_v9 }
0x12bf   :  { %1415 = vtanh.f32 %v855_v29 }
0x12c9   :  { %v1416_v30 = vpop.eup %1415 }
0x12ca   :  { %858 = vrot.lane.b32.xlu1 %v1416_v30, %s1524_s5 }
0x133c   :  { %v859_v31 = vpop.permute.xlu1 %858 }
0x133d   :  { %v861_v32 = vmul.f32 %v859_v31, %v844_v24 }
0x133f   :  { %864 = vrot.lane.b32.xlu0 %v861_v32, %s1525_s14 }
0x13b1   :  { %v865_v33 = vpop.permute.xlu0 %864 }
0x13b2   :  { %1283 = vmatmul.mubr.msk.f32.vlgmr.msra.gmra.mrb[8].mxu0 %vm146_vm3, %v865_v33 }
0x1485   :  { %v934_v35 = vpop.f32.mrb[8].mxu0 }
0x1486   :  { %v938_v36 = vadd.f32 %v934_v35, %v862_v34  ;;  %v1284_v37 = vpop.f32.mrb[9].mxu0 }
0x1488   :  { %v1141_v38 = vmul.f32 -1.442695, %v938_v36 }
0x148a   :  { %1417 = vpow2.f32 %v1141_v38 }
0x148b   :  { %1419 = vtanh.f32 %v938_v36 }
0x1494   :  { %v1418_v39 = vpop.eup %1417 }
0x1495   :  { %v943_v40 = vadd.f32 1.0, %v1418_v39  ;;  %v1420_v41 = vpop.eup %1419 }
0x1497   :  { %1421 = vrcp.f32 %v943_v40 }
0x14a1   :  { %v1422_v42 = vpop.eup %1421 }
0x14a2   :  { %v946_v43 = vsel %vm1644_vm6, %v1420_v41, %v1422_v42 }
0x14a3   :  { %949 = vrot.lane.b32.xlu1 %v946_v43, %s1524_s5  ;;  %v947_v46 = vmul.f32 %v946_v43, %v855_v29 }
0x1515   :  { %v950_v44 = vpop.permute.xlu1 %949 }
0x1516   :  { %v952_v45 = vmul.f32 %v950_v44, %v946_v43 }
0x1518   :  { %954 = vrot.lane.b32.xlu0 %v952_v45, %s1525_s14 }
0x158a   :  { %v955_v47 = vpop.permute.xlu0 %954 }
0x158b   :  { %v957_v48 = vadd.f32 %v955_v47, %v947_v46 }
0x158d   :  { %1423 = vtanh.f32 %v957_v48 }
0x1597   :  { %v1424_v54 = vpop.eup %1423 }
0x1598   :  { %960 = vrot.lane.b32.xlu1 %v1424_v54, %s1524_s5 }
0x160a   :  { %v961_v55 = vpop.permute.xlu1 %960 }
0x160b   :  { %v963_v56 = vmul.f32 %v961_v55, %v946_v43 }
0x160d   :  { %976 = vrot.lane.b32.xlu0 %v963_v56, %s1525_s14 }
0x1611   :  { %1063 = vrot.lane.b32.xlu0 %v957_v48, %s1526_s22 }
0x167f   :  { %v977_v57 = vpop.permute.xlu0 %976 }
0x1680   :  { %1294 = vmatmul.mubr.msk.f32.vlgmr.msra.gmra.mrb[8].mxu1 %vm146_vm3, %v977_v57  ;;  %1061 = vst.msk [vmem:[#allocation7] sm:$0x3] %vm1060_vm7, %v977_v57 }
0x1683   :  { %v1064_v58 = vpop.permute.xlu0 %1063 }
0x1684   :  { %1066 = vst.msk [vmem:[#allocation8] sm:$0x3] %vm1060_vm7, %v1064_v58 }
0x1753   :  { %v1046_v59 = vpop.f32.mrb[8].mxu1 }
0x1754   :  { %v1047_v60 = vadd.f32 %v1142_v6, %v1046_v59  ;;  %v1295_v61 = vpop.f32.mrb[9].mxu1 }
0x1756   :  { %v1052_v62 = vmul.f32 1.442695, %v1047_v60  ;;  %1051 = vst.msk [vmem:[#allocation3] sm:$0x3] %vm1050_vm8, %v1047_v60 }
0x1758   :  { %1425 = vpow2.f32 %v1052_v62 }
0x1759   :  { %1438 = shalt.err (!%p1435_p4)
}
0x175a   :  { %s1439_s27 = scalar_lea.hbm %s1813_s8, 32 }
0x175b   :  { %p1440_p5 = scmp.ne.s32.totalorder %s1813_s8, %s1439_s27  ;;  %p1443_p6 = scmp.lt.u32.totalorder %s1439_s27, %s1813_s8 }
0x175d   :  { %p1445_p7 = pnand %p1443_p6, %p1440_p5 }
0x175f   :  { %1448 = shalt.err (!%p1445_p7)
}
0x1760   :  { %1076 = dma.vmem_to_hbm [thread:$0]  %s1074_s25, 32, %s1813_s8, [#allocation4]  }
0x1761   :  { %s1528_s5 = smov [#allocation8]  }
0x1762   :  { %s1103_s12 = sshll.u32 %s1528_s5, 4  ;;  %s1104_s12 = int_to_ptr.vmem [resolvable:$true] %s1103_s12 }
0x1763   :  { %s1449_s13 = scalar_lea.vmem %s1104_s12, 32  ;;  %p1454_p9 = scmp.lt.s32.totalorder %s1104_s12, %s1104_s12 }
0x1764   :  { %p1450_p8 = scmp.ne.s32.totalorder %s1104_s12, %s1449_s13  ;;  %p1455_p10 = scmp.lt.s32.totalorder %s1449_s13, %s1449_s13 }
0x1766   :  { %p1456_p11 = por %p1455_p10, %p1454_p9 }
0x1768   :  { %p1457_p12 = pnand %p1456_p11, %p1450_p8 }
0x176a   :  { %1460 = shalt.err (!%p1457_p12)
}
0x176b   :  { %s1461_s15 = scalar_lea.hbm %s1816_s11, 32 }
0x176c   :  { %p1462_p13 = scmp.ne.s32.totalorder %s1816_s11, %s1461_s15  ;;  %p1465_p0 = scmp.lt.u32.totalorder %s1461_s15, %s1816_s11 }
0x176e   :  { %p1467_p1 = pnand %p1465_p0, %p1462_p13 }
0x1770   :  { %1470 = shalt.err (!%p1467_p1)
}
0x1771   :  { %1106 = dma.vmem_to_hbm [thread:$0]  %s1104_s12, 32, %s1816_s11, [#allocation9]   ;;  %v1426_v63 = vpop.eup %1425 }
0x1772   :  { %s1529_s21 = smov 124   ;;  %s1530_s22 = smov [#allocation5]  }
0x1773   :  { %1055 = vrot.lane.b32.xlu1 %v1426_v63, %s1529_s21  ;;  %s1083_s6 = sshll.u32 %s1530_s22, 4  ;;  %s1531_s23 = smov [#allocation7]   ;;  %s1084_s6 = int_to_ptr.vmem [resolvable:$true] %s1083_s6 }
0x1774   :  { %s1093_s24 = sshll.u32 %s1531_s23, 4  ;;  %s1471_s25 = scalar_lea.vmem %s1084_s6, 32  ;;  %s1094_s24 = int_to_ptr.vmem [resolvable:$true] %s1093_s24 }
0x1775   :  { %p1472_p2 = scmp.ne.s32.totalorder %s1084_s6, %s1471_s25  ;;  %p1476_p3 = scmp.lt.s32.totalorder %s1084_s6, %s1084_s6 }
0x1776   :  { %p1477_p4 = scmp.lt.s32.totalorder %s1471_s25, %s1471_s25 }
0x1778   :  { %p1478_p5 = por %p1477_p4, %p1476_p3 }
0x177a   :  { %p1479_p6 = pnand %p1478_p5, %p1472_p2 }
0x17e5   :  { %v1056_v0 = vpop.permute.xlu1 %1055 }
0x17e6   :  { %1058 = vst.msk [vmem:[#allocation5] sm:$0x3] %vm1050_vm8, %v1056_v0 }
0x17e7   :  { %1482 = shalt.err (!%p1479_p6)
}
0x17e8   :  { %s1483_s3 = scalar_lea.hbm %s1814_s9, 32 }
0x17e9   :  { %p1484_p7 = scmp.ne.s32.totalorder %s1814_s9, %s1483_s3  ;;  %p1487_p8 = scmp.lt.u32.totalorder %s1483_s3, %s1814_s9 }
0x17eb   :  { %p1489_p9 = pnand %p1487_p8, %p1484_p7 }
0x17ed   :  { %1492 = shalt.err (!%p1489_p9)
}
0x17ee   :  { %1086 = dma.vmem_to_hbm [thread:$0]  %s1084_s6, 32, %s1814_s9, [#allocation6]  }
0x17ef   :  { %s1493_s1 = scalar_lea.vmem %s1094_s24, 32  ;;  %p1498_p11 = scmp.lt.s32.totalorder %s1094_s24, %s1094_s24 }
0x17f0   :  { %p1494_p10 = scmp.ne.s32.totalorder %s1094_s24, %s1493_s1  ;;  %p1499_p12 = scmp.lt.s32.totalorder %s1493_s1, %s1493_s1 }
0x17f2   :  { %p1500_p13 = por %p1499_p12, %p1498_p11 }
0x17f4   :  { %p1501_p0 = pnand %p1500_p13, %p1494_p10 }
0x17f6   :  { %1504 = shalt.err (!%p1501_p0)
}
0x17f7   :  { %s1505_s12 = scalar_lea.hbm %s1815_s10, 32 }
0x17f8   :  { %p1506_p1 = scmp.ne.s32.totalorder %s1815_s10, %s1505_s12  ;;  %p1509_p2 = scmp.lt.u32.totalorder %s1505_s12, %s1815_s10 }
0x17fa   :  { %p1511_p3 = pnand %p1509_p2, %p1506_p1 }
0x17fc   :  { %1514 = shalt.err (!%p1511_p3)
}
0x17fd   :  { %1096 = dma.vmem_to_hbm [thread:$0]  %s1094_s24, 32, %s1815_s10, [#allocation6]  }
0x17fe   :  { %1515 = dma.done.wait [#allocation4], 32  }
0x17ff   :  { %1516 = vsyncadd [#allocation4], 4294967264 }
0x1800   :  { %1517 = dma.done.wait [#allocation6], 64  }
0x1801   :  { %1518 = vsyncadd [#allocation6], 4294967232 }
0x1802   :  { %1519 = dma.done.wait [#allocation9], 32  }
0x1803   :  { %1520 = vsyncadd [#allocation9], 4294967264 }
0x1804   :  { %1119 = vsyncpa [#allocation4], 1 }
0x1805   :  { %1120 = vsyncpa [#allocation6], 1 }
0x1806   :  { %1121 = vsyncpa [#allocation9], 1 }

</bundles_post_ra>
